<compile_context>
chip_gen: v6e
topology: v6e:2x2x1
jax: 0.10.0
libtpu: 0.0.40
codegen_flags: <defaults>
</compile_context>

<pallas_src>
import functools

import jax
import jax.numpy as jnp
from jax.experimental import pallas as pl
from jax.experimental.pallas import tpu as pltpu

# Deterministic "parameters" of the loss (the module has no learned weights).
LOSS_WEIGHTS = {"focal": 1.0, "dice": 0.5}
FOCAL_GAMMA = 2.0
DICE_SMOOTH = 1.0

_MAX_TILE_PX = 2048                 # lane-dense pixel-tile cap (multiple of 128)
_VMEM_INPUT_BUDGET = 20 * 1024 * 1024  # double-buffered input budget; safely
                                       # under the 32 MiB default scoped VMEM
                                       # limit on v7x (64 MiB physical).

# Exact reciprocal kept for the softmax denominator: it is a (1, T)-shaped op
# (1/C of the hot-path cost) and keeping it exact preserves the tight 1e-5
# numerical sanity check below.  Flip to True to move it to the EUP vrcp slot
# at ~1e-3 relative error in the dice terms.
APPROX_RECIPROCAL = False


def _focal_weight(q, gamma):
    """(1 - pt)**gamma with gamma static.  Integer gamma -> unrolled multiplies
    (no exp/log pow, no NaN hazard on a negative base)."""
    if float(int(gamma)) == float(gamma) and gamma >= 0:
        g = int(gamma)
        if g == 0:
            return jnp.ones_like(q)
        w = q
        for _ in range(g - 1):
            w = w * q
        return w
    return jnp.power(jnp.maximum(q, 0.0), gamma)


def _loss_kernel(logits_ref, target_ref,
                 focal_ref, inter_ref, psum_ref, tsum_ref,
                 *, gamma, n_pixels, tile_px, n_inner, needs_mask, approx_recip):
    """One (batch, outer-pixel-group, inner-pixel-tile) grid step.

    logits_ref: (1, C, T) float -- classes on sublanes, pixels on lanes
    target_ref: (1, 1, T) int   -- class index per pixel
    focal_ref:  (1, 1, 1, 1) f32 -- running focal sum for this (b, outer) group
    inter_ref / psum_ref / tsum_ref: (1, 1, C, 1) f32 -- running dice partials
        (intersection / prob-sum / target-count), accumulated across the inner
        (reduction) grid axis; written back to HBM once per (b, outer) group.
    """
    o = pl.program_id(1)
    i = pl.program_id(2)

    @pl.when(i == 0)
    def _():
        focal_ref[...] = jnp.zeros_like(focal_ref)
        inter_ref[...] = jnp.zeros_like(inter_ref)
        psum_ref[...] = jnp.zeros_like(psum_ref)
        tsum_ref[...] = jnp.zeros_like(tsum_ref)

    x = logits_ref[0].astype(jnp.float32)                      # (C, T)
    t = target_ref[0].astype(jnp.int32)                        # (1, T)

    if needs_mask:
        # Lane-validity of this tile (ragged last tile and/or clamped overshoot
        # tile).  Compiled out entirely when every tile is full.
        lane = jax.lax.broadcasted_iota(jnp.int32, t.shape, 1)  # (1, T)
        pix0 = (o * n_inner + i) * tile_px
        valid_b = (pix0 + lane) < n_pixels                      # (1, T) bool
        valid = valid_b.astype(jnp.float32)
        # Clamp logits so NaN/Inf in the unfilled tail cannot propagate through
        # exp/softmax; mask the target to -1 so the one-hot is already zero on
        # invalid lanes (no extra (C,T) mask multiply needed for onehot terms).
        x = jnp.where(valid_b, x, 0.0)
        t = jnp.where(valid_b, t, -1)

    # one-hot(target): class ids on the sublane axis (-1 never matches)
    class_ids = jax.lax.broadcasted_iota(jnp.int32, x.shape, 0)  # (C, T)
    onehot = (class_ids == t).astype(jnp.float32)                # (C, T)

    # numerically stable softmax over the class (sublane) axis
    m = jnp.max(x, axis=0, keepdims=True)                        # (1, T)
    e = jnp.exp(x - m)                                           # (C, T)
    s = jnp.sum(e, axis=0, keepdims=True)                        # (1, T)
    p = e * pl.reciprocal(s, approx=approx_recip)                # (C, T) (dice only)
    log_s = jnp.log(s)                                           # (1, T)

    # ---- focal term: -(1 - p_t)^gamma * log(p_t), via the log path ----
    xt = jnp.sum(x * onehot, axis=0, keepdims=True)              # (1, T)
    logpt = (xt - m) - log_s                                     # (1, T)
    pt = jnp.exp(logpt)                                          # (1, T) EUP, free slot
    w = _focal_weight(1.0 - pt, gamma)                           # (1, T)
    focal_pix = -(w * logpt)                                     # (1, T)

    if needs_mask:
        focal_pix = focal_pix * valid        # (1, T) mask only
        p_for_sum = p * valid                # psum needs masked probabilities
    else:
        p_for_sum = p

    # ---- per-step pixel-axis (lane) reductions into tiny partials ----
    # (onehot is already zero on invalid lanes, so p*onehot needs no mask.)
    inter_part = jnp.sum(p * onehot, axis=-1, keepdims=True)     # (C, 1)
    psum_part = jnp.sum(p_for_sum, axis=-1, keepdims=True)       # (C, 1)
    tsum_part = jnp.sum(onehot, axis=-1, keepdims=True)          # (C, 1)
    focal_part = jnp.sum(focal_pix, axis=-1, keepdims=True)      # (1, 1)

    focal_ref[...] += focal_part[None, None]                     # (1,1,1,1)
    inter_ref[...] += inter_part[None, None]                     # (1,1,C,1)
    psum_ref[...] += psum_part[None, None]
    tsum_ref[...] += tsum_part[None, None]


def label_anything_loss(logits, target, *, max_tile_px=_MAX_TILE_PX):
    """logits: (B, C, H, W) float (f32, or bf16 for the fast path on v5e/v6e);
    target: (B, H, W) int -> scalar loss."""
    B, C, H, W = logits.shape
    HW = H * W
    N = B * HW

    # Pure reshapes of the contiguous NCHW / NHW buffers -- no transpose, no pad.
    x = logits.reshape(B, C, HW)
    t = target.reshape(B, 1, HW)

    # Adaptive lane-dense pixel tile: as large as possible under the (double-
    # buffered) VMEM input budget; full row if the image fits in one tile.
    itemsize = jnp.dtype(logits.dtype).itemsize
    t_itemsize = jnp.dtype(target.dtype).itemsize
    per_px_bytes = 2 * (C * itemsize + t_itemsize)   # 2 = double buffering
    cap = max(128, (_VMEM_INPUT_BUDGET // per_px_bytes) // 128 * 128)
    tile_px = min(max_tile_px, cap)
    if HW <= tile_px:
        tile_px = HW
    n_tiles = pl.cdiv(HW, tile_px)

    # Split the pixel-tile axis into (outer "parallel", inner "arbitrary") so
    # both TensorCores on v7x get work even when B == 1.  An odd tile count is
    # handled by clamping the block index; the in-kernel validity mask zeroes
    # the duplicated (overshoot) tile's contribution.
    n_outer = 2 if n_tiles >= 2 else 1
    n_inner = pl.cdiv(n_tiles, n_outer)
    overshoot = (n_outer * n_inner) != n_tiles
    needs_mask = (HW % tile_px != 0) or overshoot

    if overshoot:
        def tile_idx(o, i):
            return jnp.minimum(o * n_inner + i, n_tiles - 1)
    else:
        def tile_idx(o, i):
            return o * n_inner + i

    kernel = functools.partial(
        _loss_kernel, gamma=FOCAL_GAMMA, n_pixels=HW, tile_px=tile_px,
        n_inner=n_inner, needs_mask=needs_mask, approx_recip=APPROX_RECIPROCAL)

    # TODO(synk): pack several batch elements per block when HW is tiny and B
    # is large (grid-step overhead dominated), and a pixels-on-sublanes layout
    # for C < 8 (full 8x128 vreg occupancy); both left out to keep this kernel
    # layout simple and robust.
    focal_p, inter_p, psum_p, tsum_p = pl.pallas_call(
        kernel,
        out_shape=(
            jax.ShapeDtypeStruct((B, n_outer, 1, 1), jnp.float32),
            jax.ShapeDtypeStruct((B, n_outer, C, 1), jnp.float32),
            jax.ShapeDtypeStruct((B, n_outer, C, 1), jnp.float32),
            jax.ShapeDtypeStruct((B, n_outer, C, 1), jnp.float32),
        ),
        grid_spec=pltpu.PrefetchScalarGridSpec(
            num_scalar_prefetch=0,
            grid=(B, n_outer, n_inner),
            in_specs=[
                pl.BlockSpec((1, C, tile_px),
                             lambda b, o, i: (b, 0, tile_idx(o, i))),
                pl.BlockSpec((1, 1, tile_px),
                             lambda b, o, i: (b, 0, tile_idx(o, i))),
            ],
            out_specs=[
                pl.BlockSpec((1, 1, 1, 1), lambda b, o, i: (b, o, 0, 0)),
                pl.BlockSpec((1, 1, C, 1), lambda b, o, i: (b, o, 0, 0)),
                pl.BlockSpec((1, 1, C, 1), lambda b, o, i: (b, o, 0, 0)),
                pl.BlockSpec((1, 1, C, 1), lambda b, o, i: (b, o, 0, 0)),
            ],
        ),
        compiler_params=pltpu.CompilerParams(
            # batch + outer pixel groups parallel (both TCs on v7x); inner
            # pixel-tile axis is the accumulating reduction axis.
            dimension_semantics=("parallel", "parallel", "arbitrary"),
        ),
    )(x, t)

    # ---- tiny final reductions over the (B, n_outer) partials ----
    focal_loss = jnp.sum(focal_p) / N                       # mean over pixels
    inter = jnp.sum(inter_p, axis=(0, 1))[:, 0]             # (C,)
    psum = jnp.sum(psum_p, axis=(0, 1))[:, 0]
    tsum = jnp.sum(tsum_p, axis=(0, 1))[:, 0]
    # TODO(synk): dice is computed globally over the batch (matches the in-file
    # reference); verify against the actual DiceLoss convention if per-sample
    # dice is required.
    dice_score = (2.0 * inter + DICE_SMOOTH) / (psum + tsum + DICE_SMOOTH)
    dice_loss = 1.0 - jnp.mean(dice_score)                  # mean over classes

    # TODO(synk): RMILoss / FalsePositiveLoss / PromptContrastiveLoss and
    # class_weighting (get_weight_matrix_from_labels) are not defined in the
    # reference snippet; only the focal+dice combination is implemented.
    return LOSS_WEIGHTS["focal"] * focal_loss + LOSS_WEIGHTS["dice"] * dice_loss


def _reference_loss(logits, target):
    """Pure-JAX reference of the same focal+dice combination (sanity check)."""
    B, C, H, W = logits.shape
    x = jnp.transpose(logits, (0, 2, 3, 1)).reshape(-1, C).astype(jnp.float32)
    t = target.reshape(-1).astype(jnp.int32)
    logp = jax.nn.log_softmax(x, axis=-1)
    p = jnp.exp(logp)
    onehot = jax.nn.one_hot(t, C, dtype=jnp.float32)
    pt = jnp.sum(p * onehot, axis=-1)
    logpt = jnp.sum(logp * onehot, axis=-1)
    focal = jnp.mean(-((1.0 - pt) ** FOCAL_GAMMA) * logpt)
    inter = jnp.sum(p * onehot, axis=0)
    dice_score = (2.0 * inter + DICE_SMOOTH) / (
        jnp.sum(p, axis=0) + jnp.sum(onehot, axis=0) + DICE_SMOOTH
    )
    dice = 1.0 - jnp.mean(dice_score)
    return LOSS_WEIGHTS["focal"] * focal + LOSS_WEIGHTS["dice"] * dice


if __name__ == "__main__":
    key = jax.random.PRNGKey(0)
    cases = [
        # (B, C, H,  W,  logits dtype,   tile cap)  -- exercised code paths
        (2, 4, 16, 16, jnp.float32,  _MAX_TILE_PX),  # single full tile, no mask
        (1, 5, 20, 20, jnp.float32,  128),           # ragged tail + dual-TC split
        (2, 3, 16, 24, jnp.bfloat16, 128),           # odd tile count (clamped
                                                     #   overshoot) + bf16 fast path
    ]
    for (B, C, H, W, dt, cap) in cases:
        key, k1, k2 = jax.random.split(key, 3)
        logits = jax.random.normal(k1, (B, C, H, W), dtype=jnp.float32).astype(dt)
        target = jax.random.randint(k2, (B, H, W), 0, C, dtype=jnp.int32)

        loss = jax.block_until_ready(
            label_anything_loss(logits, target, max_tile_px=cap))
        ref = jax.block_until_ready(_reference_loss(logits, target))
        assert jnp.allclose(loss, ref, rtol=2e-5, atol=2e-5), \
            (B, C, H, W, str(dt), float(loss), float(ref))
    print("KERNEL_OK")
</pallas_src>

<mosaic_0001>
module attributes {stable_mosaic.version = 11 : i64} {
  func.func @_loss_kernel(%arg0: i32, %arg1: i32, %arg2: i32, %arg3: memref<1x4x256xf32, #tpu.memory_space<vmem>>, %arg4: memref<1x1x256xi32, #tpu.memory_space<vmem>>, %arg5: memref<1x1x1x1xf32, #tpu.memory_space<vmem>>, %arg6: memref<1x1x4x1xf32, #tpu.memory_space<vmem>>, %arg7: memref<1x1x4x1xf32, #tpu.memory_space<vmem>>, %arg8: memref<1x1x4x1xf32, #tpu.memory_space<vmem>>) attributes {dimension_semantics = [#tpu.dimension_semantics<parallel>, #tpu.dimension_semantics<parallel>, #tpu.dimension_semantics<arbitrary>], iteration_bounds = array<i64: 2, 1, 1>, scalar_prefetch = 0 : i64, scratch_operands = 0 : i64, tpu.core_type = #tpu.core_type<tc>, window_params = [{transform_indices = @transform_0, window_bounds = array<i64: 1, 4, 256>}, {transform_indices = @transform_1, window_bounds = array<i64: 1, 1, 256>}, {transform_indices = @transform_2, window_bounds = array<i64: 1, 1, 1, 1>}, {transform_indices = @transform_3, window_bounds = array<i64: 1, 1, 4, 1>}, {transform_indices = @transform_4, window_bounds = array<i64: 1, 1, 4, 1>}, {transform_indices = @transform_5, window_bounds = array<i64: 1, 1, 4, 1>}]} {
    %c0_i32 = arith.constant 0 : i32
    %0 = arith.cmpi eq, %arg2, %c0_i32 : i32
    %1 = arith.extui %0 : i1 to i32
    %c0_i32_0 = arith.constant 0 : i32
    %2 = arith.cmpi ne, %1, %c0_i32_0 : i32
    scf.if %2 {
      %cst_46 = arith.constant 0.000000e+00 : f32
      %60 = vector.broadcast %cst_46 : f32 to vector<1x1x1x1xf32>
      %c0_47 = arith.constant 0 : index
      %c0_48 = arith.constant 0 : index
      %c0_49 = arith.constant 0 : index
      %c0_50 = arith.constant 0 : index
      %61 = vector.load %arg5[%c0_47, %c0_48, %c0_49, %c0_50] : memref<1x1x1x1xf32, #tpu.memory_space<vmem>>, vector<1x1x1x1xf32>
      tpu.vector_store %arg5[%c0_47, %c0_48, %c0_49, %c0_50], %60 {strides = array<i32>} : memref<1x1x1x1xf32, #tpu.memory_space<vmem>>, vector<1x1x1x1xf32>,
      %cst_51 = arith.constant 0.000000e+00 : f32
      %62 = vector.broadcast %cst_51 : f32 to vector<1x1x4x1xf32>
      %c0_52 = arith.constant 0 : index
      %c0_53 = arith.constant 0 : index
      %c0_54 = arith.constant 0 : index
      %c0_55 = arith.constant 0 : index
      %63 = vector.load %arg6[%c0_52, %c0_53, %c0_54, %c0_55] : memref<1x1x4x1xf32, #tpu.memory_space<vmem>>, vector<1x1x4x1xf32>
      tpu.vector_store %arg6[%c0_52, %c0_53, %c0_54, %c0_55], %62 {strides = array<i32>} : memref<1x1x4x1xf32, #tpu.memory_space<vmem>>, vector<1x1x4x1xf32>,
      %cst_56 = arith.constant 0.000000e+00 : f32
      %64 = vector.broadcast %cst_56 : f32 to vector<1x1x4x1xf32>
      %c0_57 = arith.constant 0 : index
      %c0_58 = arith.constant 0 : index
      %c0_59 = arith.constant 0 : index
      %c0_60 = arith.constant 0 : index
      %65 = vector.load %arg7[%c0_57, %c0_58, %c0_59, %c0_60] : memref<1x1x4x1xf32, #tpu.memory_space<vmem>>, vector<1x1x4x1xf32>
      tpu.vector_store %arg7[%c0_57, %c0_58, %c0_59, %c0_60], %64 {strides = array<i32>} : memref<1x1x4x1xf32, #tpu.memory_space<vmem>>, vector<1x1x4x1xf32>,
      %cst_61 = arith.constant 0.000000e+00 : f32
      %66 = vector.broadcast %cst_61 : f32 to vector<1x1x4x1xf32>
      %c0_62 = arith.constant 0 : index
      %c0_63 = arith.constant 0 : index
      %c0_64 = arith.constant 0 : index
      %c0_65 = arith.constant 0 : index
      %67 = vector.load %arg8[%c0_62, %c0_63, %c0_64, %c0_65] : memref<1x1x4x1xf32, #tpu.memory_space<vmem>>, vector<1x1x4x1xf32>
      tpu.vector_store %arg8[%c0_62, %c0_63, %c0_64, %c0_65], %66 {strides = array<i32>} : memref<1x1x4x1xf32, #tpu.memory_space<vmem>>, vector<1x1x4x1xf32>,
    } else {
    }
    %c0 = arith.constant 0 : index
    %c0_1 = arith.constant 0 : index
    %c0_2 = arith.constant 0 : index
    %3 = vector.load %arg3[%c0, %c0_1, %c0_2] : memref<1x4x256xf32, #tpu.memory_space<vmem>>, vector<1x4x256xf32>
    %4 = vector.shape_cast %3 : vector<1x4x256xf32> to vector<4x256xf32>
    %c0_3 = arith.constant 0 : index
    %c0_4 = arith.constant 0 : index
    %c0_5 = arith.constant 0 : index
    %5 = vector.load %arg4[%c0_3, %c0_4, %c0_5] : memref<1x1x256xi32, #tpu.memory_space<vmem>>, vector<1x1x256xi32>
    %6 = vector.shape_cast %5 : vector<1x1x256xi32> to vector<1x256xi32>
    %7 = tpu.iota {dimensions = array<i32: 0>} : vector<4x256xi32>
    %8 = vector.broadcast %6 : vector<1x256xi32> to vector<4x256xi32>
    %9 = arith.cmpi eq, %7, %8 : vector<4x256xi32>
    %10 = arith.extui %9 : vector<4x256xi1> to vector<4x256xi32>
    %11 = arith.sitofp %10 : vector<4x256xi32> to vector<4x256xf32>
    %cst = arith.constant dense<0xFF800000> : vector<256xf32>
    %12 = vector.multi_reduction <maximumf>, %4, %cst [0] : vector<4x256xf32> to vector<256xf32>
    %13 = vector.shape_cast %12 : vector<256xf32> to vector<1x256xf32>
    %14 = vector.broadcast %13 : vector<1x256xf32> to vector<4x256xf32>
    %15 = arith.subf %4, %14 : vector<4x256xf32>
    %16 = math.exp %15 : vector<4x256xf32>
    %cst_6 = arith.constant dense<0.000000e+00> : vector<256xf32>
    %17 = vector.multi_reduction <add>, %16, %cst_6 [0] : vector<4x256xf32> to vector<256xf32>
    %18 = vector.shape_cast %17 : vector<256xf32> to vector<1x256xf32>
    %19 = tpu.reciprocal %18 : vector<1x256xf32> -> vector<1x256xf32>
    %20 = vector.broadcast %19 : vector<1x256xf32> to vector<4x256xf32>
    %21 = arith.mulf %16, %20 : vector<4x256xf32>
    %22 = math.log %18 : vector<1x256xf32>
    %23 = arith.mulf %4, %11 : vector<4x256xf32>
    %cst_7 = arith.constant dense<0.000000e+00> : vector<256xf32>
    %24 = vector.multi_reduction <add>, %23, %cst_7 [0] : vector<4x256xf32> to vector<256xf32>
    %25 = vector.shape_cast %24 : vector<256xf32> to vector<1x256xf32>
    %26 = arith.subf %25, %13 : vector<1x256xf32>
    %27 = arith.subf %26, %22 : vector<1x256xf32>
    %28 = math.exp %27 : vector<1x256xf32>
    %cst_8 = arith.constant 1.000000e+00 : f32
    %29 = vector.broadcast %cst_8 : f32 to vector<1x256xf32>
    %30 = arith.subf %29, %28 : vector<1x256xf32>
    %31 = arith.mulf %30, %30 : vector<1x256xf32>
    %32 = arith.mulf %31, %27 : vector<1x256xf32>
    %cst_9 = arith.constant 0.000000e+00 : f32
    %33 = vector.broadcast %cst_9 : f32 to vector<1x256xf32>
    %34 = arith.subf %33, %32 : vector<1x256xf32>
    %35 = arith.mulf %21, %11 : vector<4x256xf32>
    %cst_10 = arith.constant dense<0.000000e+00> : vector<4xf32>
    %36 = vector.multi_reduction <add>, %35, %cst_10 [1] : vector<4x256xf32> to vector<4xf32>
    %37 = vector.shape_cast %36 : vector<4xf32> to vector<4x1xf32>
    %cst_11 = arith.constant dense<0.000000e+00> : vector<4xf32>
    %38 = vector.multi_reduction <add>, %21, %cst_11 [1] : vector<4x256xf32> to vector<4xf32>
    %39 = vector.shape_cast %38 : vector<4xf32> to vector<4x1xf32>
    %cst_12 = arith.constant dense<0.000000e+00> : vector<4xf32>
    %40 = vector.multi_reduction <add>, %11, %cst_12 [1] : vector<4x256xf32> to vector<4xf32>
    %41 = vector.shape_cast %40 : vector<4xf32> to vector<4x1xf32>
    %cst_13 = arith.constant dense<0.000000e+00> : vector<1xf32>
    %42 = vector.multi_reduction <add>, %34, %cst_13 [1] : vector<1x256xf32> to vector<1xf32>
    %43 = vector.shape_cast %42 : vector<1xf32> to vector<1x1xf32>
    %c0_14 = arith.constant 0 : index
    %c0_15 = arith.constant 0 : index
    %c0_16 = arith.constant 0 : index
    %c0_17 = arith.constant 0 : index
    %44 = vector.load %arg5[%c0_14, %c0_15, %c0_16, %c0_17] : memref<1x1x1x1xf32, #tpu.memory_space<vmem>>, vector<1x1x1x1xf32>
    %45 = vector.shape_cast %43 : vector<1x1xf32> to vector<1x1x1x1xf32>
    %46 = arith.addf %44, %45 : vector<1x1x1x1xf32>
    %c0_18 = arith.constant 0 : index
    %c0_19 = arith.constant 0 : index
    %c0_20 = arith.constant 0 : index
    %c0_21 = arith.constant 0 : index
    %47 = vector.load %arg5[%c0_18, %c0_19, %c0_20, %c0_21] : memref<1x1x1x1xf32, #tpu.memory_space<vmem>>, vector<1x1x1x1xf32>
    tpu.vector_store %arg5[%c0_18, %c0_19, %c0_20, %c0_21], %46 {strides = array<i32>} : memref<1x1x1x1xf32, #tpu.memory_space<vmem>>, vector<1x1x1x1xf32>,
    %c0_22 = arith.constant 0 : index
    %c0_23 = arith.constant 0 : index
    %c0_24 = arith.constant 0 : index
    %c0_25 = arith.constant 0 : index
    %48 = vector.load %arg6[%c0_22, %c0_23, %c0_24, %c0_25] : memref<1x1x4x1xf32, #tpu.memory_space<vmem>>, vector<1x1x4x1xf32>
    %49 = vector.shape_cast %37 : vector<4x1xf32> to vector<1x1x4x1xf32>
    %50 = arith.addf %48, %49 : vector<1x1x4x1xf32>
    %c0_26 = arith.constant 0 : index
    %c0_27 = arith.constant 0 : index
    %c0_28 = arith.constant 0 : index
    %c0_29 = arith.constant 0 : index
    %51 = vector.load %arg6[%c0_26, %c0_27, %c0_28, %c0_29] : memref<1x1x4x1xf32, #tpu.memory_space<vmem>>, vector<1x1x4x1xf32>
    tpu.vector_store %arg6[%c0_26, %c0_27, %c0_28, %c0_29], %50 {strides = array<i32>} : memref<1x1x4x1xf32, #tpu.memory_space<vmem>>, vector<1x1x4x1xf32>,
    %c0_30 = arith.constant 0 : index
    %c0_31 = arith.constant 0 : index
    %c0_32 = arith.constant 0 : index
    %c0_33 = arith.constant 0 : index
    %52 = vector.load %arg7[%c0_30, %c0_31, %c0_32, %c0_33] : memref<1x1x4x1xf32, #tpu.memory_space<vmem>>, vector<1x1x4x1xf32>
    %53 = vector.shape_cast %39 : vector<4x1xf32> to vector<1x1x4x1xf32>
    %54 = arith.addf %52, %53 : vector<1x1x4x1xf32>
    %c0_34 = arith.constant 0 : index
    %c0_35 = arith.constant 0 : index
    %c0_36 = arith.constant 0 : index
    %c0_37 = arith.constant 0 : index
    %55 = vector.load %arg7[%c0_34, %c0_35, %c0_36, %c0_37] : memref<1x1x4x1xf32, #tpu.memory_space<vmem>>, vector<1x1x4x1xf32>
    tpu.vector_store %arg7[%c0_34, %c0_35, %c0_36, %c0_37], %54 {strides = array<i32>} : memref<1x1x4x1xf32, #tpu.memory_space<vmem>>, vector<1x1x4x1xf32>,
    %c0_38 = arith.constant 0 : index
    %c0_39 = arith.constant 0 : index
    %c0_40 = arith.constant 0 : index
    %c0_41 = arith.constant 0 : index
    %56 = vector.load %arg8[%c0_38, %c0_39, %c0_40, %c0_41] : memref<1x1x4x1xf32, #tpu.memory_space<vmem>>, vector<1x1x4x1xf32>
    %57 = vector.shape_cast %41 : vector<4x1xf32> to vector<1x1x4x1xf32>
    %58 = arith.addf %56, %57 : vector<1x1x4x1xf32>
    %c0_42 = arith.constant 0 : index
    %c0_43 = arith.constant 0 : index
    %c0_44 = arith.constant 0 : index
    %c0_45 = arith.constant 0 : index
    %59 = vector.load %arg8[%c0_42, %c0_43, %c0_44, %c0_45] : memref<1x1x4x1xf32, #tpu.memory_space<vmem>>, vector<1x1x4x1xf32>
    tpu.vector_store %arg8[%c0_42, %c0_43, %c0_44, %c0_45], %58 {strides = array<i32>} : memref<1x1x4x1xf32, #tpu.memory_space<vmem>>, vector<1x1x4x1xf32>,
    return
  }
  func.func @transform_0(%arg0: i32, %arg1: i32, %arg2: i32) -> (i32, i32, i32) {
    %c1_i32 = arith.constant 1 : i32
    %0 = arith.muli %arg1, %c1_i32 : i32
    %1 = arith.addi %0, %arg2 : i32
    %c0_i32 = arith.constant 0 : i32
    %c0_i32_0 = arith.constant 0 : i32
    return %arg0, %c0_i32, %1 : i32, i32, i32
  }
  func.func @transform_1(%arg0: i32, %arg1: i32, %arg2: i32) -> (i32, i32, i32) {
    %c1_i32 = arith.constant 1 : i32
    %0 = arith.muli %arg1, %c1_i32 : i32
    %1 = arith.addi %0, %arg2 : i32
    %c0_i32 = arith.constant 0 : i32
    %c0_i32_0 = arith.constant 0 : i32
    return %arg0, %c0_i32, %1 : i32, i32, i32
  }
  func.func @transform_2(%arg0: i32, %arg1: i32, %arg2: i32) -> (i32, i32, i32, i32) {
    %c0_i32 = arith.constant 0 : i32
    %c0_i32_0 = arith.constant 0 : i32
    %c0_i32_1 = arith.constant 0 : i32
    return %arg0, %arg1, %c0_i32, %c0_i32_0 : i32, i32, i32, i32
  }
  func.func @transform_3(%arg0: i32, %arg1: i32, %arg2: i32) -> (i32, i32, i32, i32) {
    %c0_i32 = arith.constant 0 : i32
    %c0_i32_0 = arith.constant 0 : i32
    %c0_i32_1 = arith.constant 0 : i32
    return %arg0, %arg1, %c0_i32, %c0_i32_0 : i32, i32, i32, i32
  }
  func.func @transform_4(%arg0: i32, %arg1: i32, %arg2: i32) -> (i32, i32, i32, i32) {
    %c0_i32 = arith.constant 0 : i32
    %c0_i32_0 = arith.constant 0 : i32
    %c0_i32_1 = arith.constant 0 : i32
    return %arg0, %arg1, %c0_i32, %c0_i32_0 : i32, i32, i32, i32
  }
  func.func @transform_5(%arg0: i32, %arg1: i32, %arg2: i32) -> (i32, i32, i32, i32) {
    %c0_i32 = arith.constant 0 : i32
    %c0_i32_0 = arith.constant 0 : i32
    %c0_i32_1 = arith.constant 0 : i32
    return %arg0, %arg1, %c0_i32, %c0_i32_0 : i32, i32, i32, i32
  }
}

</mosaic_0001>

<bundles_post_ra>
// kernel: tpu_custom_call.1
= control target key start
LH: loop header
LB: loop body
LE: loop exit
PB: predicated region body
PF: predicated region fallthrough
CT: control target
= control target key end

     0   :  { %11 = vsyncpa [#allocation3], 0  ;;  %s1194_s0 = inlined_call_operand.hbm [shape: f32[2,4,256], index: 0, kind: input, shape index: {}]   ;;  %s1195_s1 = inlined_call_operand.hbm [shape: s32[2,1,256], index: 1, kind: input, shape index: {}]   ;;  %s1196_s2 = inlined_call_operand.vmem [shape: f32[2,1,1,1], index: 2, kind: output, shape index: {0}]   ;;  %s1197_s3 = inlined_call_operand.vmem [shape: f32[2,1,4,1], index: 3, kind: output, shape index: {1}]   ;;  %s1198_s4 = inlined_call_operand.vmem [shape: f32[2,1,4,1], index: 4, kind: output, shape index: {2}]   ;;  %s1199_s5 = inlined_call_operand.vmem [shape: f32[2,1,4,1], index: 5, kind: output, shape index: {3}]  }
   0x1   :  { %13 = vsyncpa [#allocation3 + $0x1], 0 }
   0x2   :  { %14 = vsyncpa [#allocation5], 0 }
   0x3   :  { %16 = vsyncpa [#allocation5 + $0x1], 0  ;;  %s1012_s18 = smov 0   ;;  %s1014_s19 = smov 0  }
   0x4   :  { %s1016_s20 = smov 0   ;;  %s1018_s21 = smov 0  }
   0x5   :  { %s1020_s22 = smov 0   ;;  %s1022_s23 = smov 0  }
   0x6 LB: > { %s769_s24 = sadd.s32 4294967295, %s977_s23   ;;  %s41_s25 = sadd.s32 1, %s973_s22  ;;  %s977_s23 = sphi %s1022_s23, %s22_s23   ;;  %s973_s22 = sphi %s1020_s22, %s1208_s22   ;;  %s969_s21 = sphi %s1018_s21, %s1207_s21   ;;  %s965_s20 = sphi %s1016_s20, %s1206_s20   ;;  %s961_s19 = sphi %s1014_s19, %s1205_s19   ;;  %s957_s18 = sphi %s1012_s18, %s1204_s18  }
   0x7   : > { %p43_p0 = scmp.ge.s32.totalorder %s41_s25, 2  ;;  %s52_s26 = sadd.s32 1, %s965_s20 }
   0x8   : > { %p59_p1 = scmp.ne.s32.totalorder %s965_s20, %s961_s19  ;;  %p60_p2 = scmp.eq.s32.totalorder %s977_s23, 0 }
   0x9   : > { %s1210_s25 = smov (%p43_p0, %s41_s25), 0  ;;  %p65_p4 = scmp.ne.s32.totalorder %s961_s19, %s957_s18 }
   0xa   : > { %p1048_p3 = por %p60_p2, %p59_p1  ;;  %s47_s28 = ssub.s32 %s973_s22, %s1210_s25 }
   0xb   : > { %p66_p5 = scmp.eq.s32.totalorder %s769_s24, 0  ;;  %p50_p6 = scmp.eq.s32.totalorder %s47_s28, 0 }
   0xc   : > { %p802_p8 = scmp.lt.s32.totalorder %s977_s23, 2  ;;  %s1064_s6 = sand.u32 1, %s965_s20  }
   0xd   : > { %p1055_p7 = por %p66_p5, %p65_p4  ;;  %s789_s7 = sshll.u32 %s973_s22, 7 }
   0xe   : > { %s1061_s30 = scalar_select %p50_p6, %s965_s20, %s52_s26  }
   0xf   : > { %s773_s8 = sshll.u32 %s1064_s6, 3  ;;  %s244_s11 = scalar_lea.hbm %s1194_s0, %s789_s7 }
  0x10   : > { %s235_s12 = scalar_lea.vmem [#allocation2], %s773_s8  ;;  %p1073_p9 = pnand %p802_p8, %p1048_p3 }
  0x11   : > { %s246_s13 = sshll.u32 %s235_s12, 4  ;;  %p779_p10 = scmp.ge.s32.totalorder %s977_s23, 1  ;;  %s247_s13 = int_to_ptr.vmem [resolvable:$true] %s246_s13 }
  0x12   : > { %p273_p11 = scmp.lt.s32.totalorder %s977_s23, 3  ;;  %s232_s15 = scalar_lea.sflag [#allocation3], %s1064_s6 }
  0x13   : > { %p869_p12 = pneg %p1073_p9  ;;  %s880_s16 = scalar_lea.vmem %s247_s13, 128 }
  0x14   : > { %p881_p13 = scmp.ne.s32.totalorder %s247_s13, %s880_s16  ;;  %s979_s17 = smov [#allocation2]  }
  0x15   : > { %s885_s18 = sshll.u32 %s979_s17, 4  ;;  %s886_s18 = int_to_ptr.vmem [resolvable:$false] %s885_s18 }
  0x16   : > { %p883_p0 = pnand %p881_p13, %p869_p12  ;;  %s887_s24 = scalar_lea.vmem %s886_s18, 256 }
  0x17   : > { %p888_p2 = scmp.lt.s32.totalorder %s247_s13, %s886_s18  ;;  %p889_p3 = scmp.lt.s32.totalorder %s887_s24, %s880_s16 }
  0x18   : > { %p884_p1 = pneg %p883_p0 }
  0x19   : > { %p890_p4 = por %p889_p3, %p888_p2 }
  0x1b   : > { %p891_p5 = pnand %p890_p4, %p884_p1 }
  0x1d   : > { %894 = shalt.err (!%p891_p5)
}
  0x1e   : > { %798 = dma.hbm_to_vmem [thread:$0]  (!%p1073_p9), %s244_s11, 128, %s247_s13, %s232_s15  }
  0x1f   : > { %p1091_p6 = pnand %p779_p10, %p273_p11  ;;  %s776_s27 = sshll.u32 %s1064_s6, 1 }
  0x20   : > { %s790_s28 = sshll.u32 %s973_s22, 5  ;;  %s257_s10 = scalar_lea.vmem [#allocation4], %s776_s27 }
  0x21   : > { %s266_s9 = scalar_lea.hbm %s1195_s1, %s790_s28  ;;  %s268_s12 = sshll.u32 %s257_s10, 4  ;;  %s269_s12 = int_to_ptr.vmem [resolvable:$true] %s268_s12 }
  0x22   : > { %s254_s16 = scalar_lea.sflag [#allocation5], %s1064_s6  ;;  %s908_s17 = scalar_lea.vmem %s269_s12, 32 }
  0x23   : > { %p909_p8 = scmp.ne.s32.totalorder %s269_s12, %s908_s17  ;;  %s980_s11 = smov [#allocation4]  }
  0x24   : > { %s913_s13 = sshll.u32 %s980_s11, 4  ;;  %s914_s13 = int_to_ptr.vmem [resolvable:$false] %s913_s13 }
  0x25   : > { %p911_p13 = pnand %p909_p8, %p869_p12  ;;  %s915_s15 = scalar_lea.vmem %s914_s13, 64 }
  0x26   : > { %p916_p10 = scmp.lt.s32.totalorder %s269_s12, %s914_s13  ;;  %p917_p11 = scmp.lt.s32.totalorder %s915_s15, %s908_s17 }
  0x27   : > { %p912_p0 = pneg %p911_p13 }
  0x28   : > { %p918_p1 = por %p917_p11, %p916_p10 }
  0x2a   : > { %p919_p2 = pnand %p918_p1, %p912_p0 }
  0x2c   : > { %922 = shalt.err (!%p919_p2)
}
  0x2d   : > { %801 = dma.hbm_to_vmem [thread:$0]  (!%p1073_p9), %s266_s9, 32, %s269_s12, %s254_s16  }
  0x2e   : > { %277 = sbr.rel (%p1091_p6) target bundleno = 292 (0x124), region = 28  ;;  %s279_s6 = sand.u32 (!%p1091_p6), 1, %s961_s19  }
  0x2f   : > { %s780_s18 = sshll.u32 (!%p1091_p6), %s279_s6, 3  ;;  %s280_s24 = scalar_lea.sflag (!%p1091_p6), [#allocation3], %s279_s6 }
  0x30   : > { %s283_s27 = scalar_lea.vmem (!%p1091_p6), [#allocation2], %s780_s18 }
  0x33   : > { %948 = dma.done.wait (%p1055_p7), %s280_s24, 128  }
  0x34   : > { %950 = vsyncadd (%p1055_p7), %s280_s24, 4294967168  ;;  %s781_s28 = sshll.u32 %s279_s6, 1  ;;  %s289_s7 = scalar_lea.sflag [#allocation5], %s279_s6 }
  0x35   : > { %s292_s8 = scalar_lea.vmem [#allocation4], %s781_s28 }
  0x36   : > { %952 = dma.done.wait (%p1055_p7), %s289_s7, 32  }
  0x37   : > { %954 = vsyncadd (%p1055_p7), %s289_s7, 4294967264  ;;  %v389_v0 = vlaneseq  ;;  %p350_p9 = scmp.lt.s32.totalorder %s969_s21, 1  ;;  %vm383_vm0 = vcmask 3072   ;;  %vm408_vm1 = vcmask 1043456   ;;  %v981_v4 = vmov 0.0   ;;  %v387_v6 = vld [vmem:[%s283_s27] sm:$0xff] }
  0x38   : > { %v388_v5 = vld [vmem:[%s292_s8] sm:$0x3]  ;;  %v406_v9 = vcombine.high %v387_v6, %v387_v6  ;;  %v409_v10 = vsel %vm408_vm1, %v387_v6, -inf  ;;  %vm381_vm4 = vcmask 0  }
  0x39   : > { %v390_v1 = vshrl.u32 %v389_v0, 7  ;;  %s1212_s21 = smov (!%p350_p9, %s969_s21), 1  ;;  %v410_v11 = vrot.slane %v409_v10, 4 }
  0x3a   : > { %s1122_s14 = sshll.u32 %s1212_s21, 2  ;;  %v416_v12 = vsel %vm408_vm1, %v406_v9, -inf  ;;  %s355_s13 = scalar_lea.vmem %s1196_s2, %s1212_s21 }
  0x3b   : > { %v393_v2 = vsub.s32 0, %v390_v1  ;;  %v397_v3 = vsub.s32 1, %v390_v1  ;;  %s1128_s29 = scalar_lea.vmem %s1199_s5, %s1122_s14  ;;  %v411_v15 = vmax.f32 %v409_v10, %v410_v11  ;;  %v417_v16 = vrot.slane %v416_v12, 4  ;;  %s1143_s16 = scalar_lea.vmem %s1197_s3, %s1122_s14  ;;  %382 = vst.msk [vmem:[%s355_s13] sm:$0x1] %vm381_vm4, %v981_v4 }
  0x3c   : > { %386 = vst.msk [vmem:[%s1128_s29] sm:$0xf] %vm383_vm0, %v981_v4  ;;  %384 = vst.msk [vmem:[%s1143_s16] sm:$0xf] %vm383_vm0, %v981_v4  ;;  %s369_s18 = scalar_lea.vmem %s1198_s4, %s1122_s14 }
  0x3d   : > { %v394_v7 = vrot.slane %v388_v5, %v393_v2  ;;  %v398_v8 = vrot.slane %v388_v5, %v397_v3  ;;  %v412_v20 = vrot.slane %v411_v15, 2  ;;  %v418_v21 = vmax.f32 %v416_v12, %v417_v16  ;;  %385 = vst.msk [vmem:[%s369_s18] sm:$0xf] %vm383_vm0, %v981_v4 }
  0x3f   : > { %vm399_vm2 = vcmp.eq.s32.totalorder %v390_v1, %v394_v7  ;;  %vm400_vm3 = vcmp.eq.s32.totalorder %v390_v1, %v398_v8  ;;  %v413_v22 = vmax.f32 %v411_v15, %v412_v20  ;;  %v419_v23 = vrot.slane %v418_v21, 2 }
  0x40   : > { %v785_v13 = vsel %vm399_vm2, 1.0, %v981_v4  ;;  %v786_v14 = vsel %vm400_vm3, 1.0, %v981_v4 }
  0x41   : > { %v513_v17 = vsel %vm408_vm1, %v785_v13, 0.0  ;;  %v514_v18 = vsel %vm408_vm1, %v786_v14, 0.0  ;;  %v414_v24 = vrot.slane %v413_v22, 1  ;;  %v420_v25 = vmax.f32 %v418_v21, %v419_v23 }
  0x42   : > { %v515_v19 = vadd.f32 %v514_v18, %v513_v17  ;;  %v460_v32 = vcombine.low %v785_v13, %v786_v14 }
  0x43   : > { %v415_v26 = vmax.f32 %v413_v22, %v414_v24  ;;  %v421_v27 = vrot.slane %v420_v25, 1 }
  0x44   : > { %516 = vadd.xlane.f32.xlu1 %v515_v19  ;;  %v462_v33 = vmul.f32 %v460_v32, %v387_v6 }
  0x45   : > { %v422_v28 = vmax.f32 %v420_v25, %v421_v27 }
  0x46   : > { %v464_v34 = vcombine.high %v462_v33, %v462_v33  ;;  %v466_v36 = vsel %vm408_vm1, %v462_v33, 0.0 }
  0x47   : > { %v425_v29 = vcombine.low %v415_v26, %v422_v28  ;;  %v467_v41 = vrot.slane %v466_v36, 4 }
  0x48   : > { %v473_v39 = vsel %vm408_vm1, %v464_v34, 0.0 }
  0x49   : > { %v427_v30 = vsub.f32 %v387_v6, %v425_v29  ;;  %v474_v45 = vrot.slane %v473_v39, 4  ;;  %v468_v48 = vadd.f32 %v467_v41, %v466_v36  ;;  %v532_v36 = vld [vmem:[%s1128_s29] sm:$0xf] }
  0x4b   : > { %v428_v31 = vmul.f32 1.442695, %v427_v30  ;;  %v475_v51 = vadd.f32 %v474_v45, %v473_v39  ;;  %v469_v54 = vrot.slane %v468_v48, 2  ;;  %v525_v39 = vld [vmem:[%s1143_s16] sm:$0xf] }
  0x4c   : > { %v521_v45 = vld [vmem:[%s355_s13] sm:$0x1] }
  0x4d   : > { %853 = vpow2.f32 %v428_v31  ;;  %v476_v57 = vrot.slane %v475_v51, 2  ;;  %v470_v59 = vadd.f32 %v469_v54, %v468_v48 }
  0x4f   : > { %v477_v60 = vadd.f32 %v476_v57, %v475_v51  ;;  %v471_v61 = vrot.slane %v470_v59, 1 }
  0x51   : > { %v478_v62 = vrot.slane %v477_v60, 1  ;;  %v472_v63 = vadd.f32 %v471_v61, %v470_v59 }
  0x53   : > { %v479_v0 = vadd.f32 %v478_v62, %v477_v60  ;;  %v480_v2 = vsub.f32 %v472_v63, %v415_v26 }
  0x55   : > { %v481_v7 = vsub.f32 %v479_v0, %v422_v28 }
  0x5a   : > { %v854_v35 = vpop.eup %853 }
  0x5b   : > { %v431_v37 = vcombine.high %v854_v35, %v854_v35  ;;  %v433_v38 = vsel %vm408_vm1, %v854_v35, 0.0 }
  0x5c   : > { %v434_v40 = vrot.slane %v433_v38, 4 }
  0x5d   : > { %v440_v42 = vsel %vm408_vm1, %v431_v37, 0.0 }
  0x5e   : > { %v435_v43 = vadd.f32 %v434_v40, %v433_v38  ;;  %v441_v44 = vrot.slane %v440_v42, 4 }
  0x60   : > { %v436_v46 = vrot.slane %v435_v43, 2  ;;  %v442_v47 = vadd.f32 %v441_v44, %v440_v42  ;;  %v529_v42 = vld [vmem:[%s369_s18] sm:$0xf] }
  0x62   : > { %v437_v49 = vadd.f32 %v436_v46, %v435_v43  ;;  %v443_v50 = vrot.slane %v442_v47, 2 }
  0x64   : > { %v438_v52 = vrot.slane %v437_v49, 1  ;;  %v444_v53 = vadd.f32 %v443_v50, %v442_v47 }
  0x66   : > { %v439_v55 = vadd.f32 %v438_v52, %v437_v49  ;;  %v445_v56 = vrot.slane %v444_v53, 1 }
  0x68   : > { %v446_v58 = vadd.f32 %v445_v56, %v444_v53  ;;  %855 = vrcp.f32 %v439_v55 }
  0x69   : > { %857 = vlog2.f32 %v439_v55 }
  0x6a   : > { %859 = vrcp.f32 %v446_v58 }
  0x6b   : > { %861 = vlog2.f32 %v446_v58 }
  0x75   : > { %v856_v1 = vpop.eup %855 }
  0x76   : > { %v858_v3 = vpop.eup %857 }
  0x77   : > { %v860_v5 = vpop.eup %859  ;;  %v455_v6 = vmul.f32 0.6931472, %v858_v3 }
  0x78   : > { %v862_v8 = vpop.eup %861  ;;  %v451_v9 = vcombine.low %v856_v1, %v860_v5 }
  0x79   : > { %v457_v10 = vmul.f32 0.6931472, %v862_v8  ;;  %v482_v11 = vsub.f32 %v480_v2, %v455_v6 }
  0x7a   : > { %v453_v12 = vmul.f32 %v854_v35, %v451_v9 }
  0x7b   : > { %v483_v13 = vsub.f32 %v481_v7, %v457_v10  ;;  %v484_v14 = vmul.f32 1.442695, %v482_v11 }
  0x7c   : > { %v496_v15 = vmul.f32 %v460_v32, %v453_v12  ;;  %v506_v16 = vcombine.high %v453_v12, %v453_v12  ;;  %v508_v21 = vsel %vm408_vm1, %v453_v12, 0.0 }
  0x7d   : > { %863 = vpow2.f32 %v484_v14  ;;  %v486_v17 = vmul.f32 1.442695, %v483_v13 }
  0x7e   : > { %v498_v18 = vcombine.high %v496_v15, %v496_v15  ;;  %v500_v19 = vsel %vm408_vm1, %v496_v15, 0.0  ;;  %v509_v22 = vsel %vm408_vm1, %v506_v16, 0.0 }
  0x7f   : > { %865 = vpow2.f32 %v486_v17  ;;  %v510_v24 = vadd.f32 %v509_v22, %v508_v21 }
  0x80   : > { %v501_v20 = vsel %vm408_vm1, %v498_v18, 0.0 }
  0x81   : > { %v502_v23 = vadd.f32 %v501_v20, %v500_v19 }
  0x83   : > { %503 = vadd.xlane.f32.xlu0 %v502_v23 }
  0x87   : > { %511 = vadd.xlane.f32.xlu0 %v510_v24 }
  0x8a   : > { %v864_v25 = vpop.eup %863 }
  0x8b   : > { %v488_v26 = vsub.f32 1.0, %v864_v25 }
  0x8c   : > { %v866_v27 = vpop.eup %865 }
  0x8d   : > { %v489_v28 = vsub.f32 1.0, %v866_v27  ;;  %v490_v29 = vmul.f32 %v488_v26, %v488_v26 }
  0x8f   : > { %v491_v30 = vmul.f32 %v489_v28, %v489_v28  ;;  %v492_v31 = vmul.f32 %v490_v29, %v482_v11 }
  0x91   : > { %v493_v32 = vmul.f32 %v491_v30, %v483_v13  ;;  %v494_v33 = vsub.f32 0.0, %v492_v31 }
  0x93   : > { %v495_v34 = vsub.f32 0.0, %v493_v32 }
  0x95   : > { %v518_v35 = vadd.f32 %v495_v34, %v494_v33 }
  0x97   : > { %519 = vadd.xlane.f32.xlu1 %v518_v35 }
  0xcd   : > { %v517_v37 = vpop.xlane.xlu1 %516 }
  0xce   : > { %v533_v38 = vadd.f32 %v532_v36, %v517_v37 }
  0xd0   : > { %534 = vst.msk [vmem:[%s1128_s29] sm:$0xf] %vm383_vm0, %v533_v38 }
 0x10c   : > { %v504_v40 = vpop.xlane.xlu0 %503 }
 0x10d   : > { %v526_v41 = vadd.f32 %v525_v39, %v504_v40 }
 0x10f   : > { %528 = vst.msk [vmem:[%s1143_s16] sm:$0xf] %vm383_vm0, %v526_v41 }
 0x110   : > { %v512_v43 = vpop.xlane.xlu0 %511 }
 0x111   : > { %v530_v44 = vadd.f32 %v529_v42, %v512_v43 }
 0x113   : > { %531 = vst.msk [vmem:[%s369_s18] sm:$0xf] %vm383_vm0, %v530_v44 }
 0x120   : > { %v520_v46 = vpop.xlane.xlu1 %519 }
 0x121   : > { %v522_v47 = vadd.f32 %v521_v45, %v520_v46 }
 0x123   : > { %524 = vst.msk [vmem:[%s355_s13] sm:$0x1] %vm381_vm4, %v522_v47 }
 0x124 PF: > { %s22_s23 = sadd.s32 1, %s977_s23   ;;  %s1204_s18 = smov %s961_s19 }
 0x125   : > { %p19_p7 = scmp.ge.s32.totalorder %s22_s23, 4   ;;  %s1205_s19 = smov %s965_s20 }
 0x126   : > { %s1206_s20 = smov %s1061_s30  ;;  %s1207_s21 = smov %s973_s22 }
 0x127   : > { %s1208_s22 = smov %s1210_s25  ;;  %21 = sbr.rel (!%p19_p7) target bundleno = 6 (0x6), region = 121 }
 0x12c   :  { %618 = vsyncpa [#allocation3], 1 }
 0x12d   :  { %620 = vsyncpa [#allocation3 + $0x1], 1 }
 0x12e   :  { %621 = vsyncpa [#allocation5], 1 }
 0x12f   :  { %623 = vsyncpa [#allocation5 + $0x1], 1 }

</bundles_post_ra>
